<compile_context>
chip_gen: v7x
topology: tpu7x:2x2x1
jax: 0.10.0
libtpu: 0.0.40
codegen_flags: <defaults>
</compile_context>

<pallas_src>
import jax
import jax.numpy as jnp
from jax.experimental import pallas as pl
from jax.experimental.pallas import tpu as pltpu


def _round_up(x, m):
    return (x + m - 1) // m * m


def _mlp_kernel(x_ref, w1_ref, b1_ref, w2_ref, b2_ref, w3_ref, b3_ref, o_ref):
    # x tile: (tile_b, in_p) bf16
    x = x_ref[...]
    # Layer 1: bf16 MXU matmul, f32 accumulate; bias + ReLU in f32.
    h1 = jnp.dot(x, w1_ref[...], preferred_element_type=jnp.float32)
    h1 = jnp.maximum(h1 + b1_ref[...], 0.0)
    # Dropout(0.2): identity at inference time.
    # Layer 2: cast activations to bf16 for the MXU, accumulate f32.
    h2 = jnp.dot(h1.astype(jnp.bfloat16), w2_ref[...],
                 preferred_element_type=jnp.float32)
    h2 = jnp.maximum(h2 + b2_ref[...], 0.0)
    # Dropout(0.2): identity at inference time.
    # Layer 3 (hidden -> 1): VPU multiply + lane reduce instead of an N=1 MXU matmul;
    # store lane-dense as a (1, tile_b) row. b3 is a scalar from SMEM.
    y = jnp.sum(h2 * w3_ref[...], axis=-1) + b3_ref[0]          # (tile_b,)
    o_ref[...] = y[None, :].astype(o_ref.dtype)                 # (1, tile_b)


def output_layer_forward(x, params, *, tile_b=None):
    """x: (B, input_size) float32 -> (B, 1) float32."""
    B, in_dim = x.shape
    w1, b1, w2, b2, w3, b3 = params
    hidden = w1.shape[1]

    # Lane-align feature dims (zero-padded weights; padded lanes stay exactly zero).
    in_p = _round_up(in_dim, 128)
    hid_p = _round_up(hidden, 128)

    # Batch tiling: bounded tiles so the x-tile DMA pipelines and the parallel axis can be
    # sharded across TensorCores; small batches use a single (sublane-aligned) tile.
    if tile_b is None:
        tile_b = 512 if B >= 1024 else _round_up(max(B, 8), 8)
    B_pad = _round_up(B, tile_b)
    grid = (B_pad // tile_b,)

    f32, bf16 = jnp.float32, jnp.bfloat16
    xp = jnp.zeros((B_pad, in_p), bf16).at[:B, :in_dim].set(x.astype(bf16))
    w1p = jnp.zeros((in_p, hid_p), bf16).at[:in_dim, :hidden].set(w1.astype(bf16))
    b1p = jnp.zeros((1, hid_p), f32).at[:, :hidden].set(b1.astype(f32))
    w2p = jnp.zeros((hid_p, hid_p), bf16).at[:hidden, :hidden].set(w2.astype(bf16))
    b2p = jnp.zeros((1, hid_p), f32).at[:, :hidden].set(b2.astype(f32))
    w3p = jnp.zeros((1, hid_p), f32).at[0, :hidden].set(w3[:, 0].astype(f32))
    b3s = b3.reshape((1,)).astype(f32)

    # VMEM budget: single-copy weights + double-buffered x/out tiles + f32 intermediates.
    weight_bytes = (in_p * hid_p + hid_p * hid_p) * 2 + (3 * hid_p) * 4
    vmem_need = (weight_bytes
                 + 2 * tile_b * in_p * 2      # x tiles (bf16, double buffered)
                 + 2 * tile_b * 4             # out tiles (f32, double buffered)
                 + 4 * tile_b * hid_p * 4)    # live h1/h2 f32 values + headroom
    vmem_limit = int(min(max(vmem_need + (4 << 20), 32 << 20), 60 << 20))

    flops = 2 * B_pad * (in_p * hid_p + hid_p * hid_p + hid_p)
    bytes_accessed = (B_pad * in_p * 2) + weight_bytes + 4 + (B_pad * 4)
    cost = pl.CostEstimate(flops=flops, transcendentals=0,
                           bytes_accessed=bytes_accessed)

    resident = pl.BlockSpec(memory_space=pltpu.MemorySpace.VMEM)  # whole array, not pipelined

    out = pl.pallas_call(
        _mlp_kernel,
        out_shape=jax.ShapeDtypeStruct((1, B_pad), jnp.float32),
        grid=grid,
        in_specs=[
            pl.BlockSpec((tile_b, in_p), lambda i: (i, 0)),      # x tile (pipelined)
            resident,                                            # W1^T (bf16)
            resident,                                            # b1   (f32)
            resident,                                            # W2^T (bf16)
            resident,                                            # b2   (f32)
            resident,                                            # w3 row (f32)
            pl.BlockSpec(memory_space=pltpu.MemorySpace.SMEM),   # b3 scalar
        ],
        out_specs=pl.BlockSpec((1, tile_b), lambda i: (0, i)),   # lane-dense output row
        compiler_params=pltpu.CompilerParams(
            dimension_semantics=("parallel",),
            vmem_limit_bytes=vmem_limit,
        ),
        cost_estimate=cost,
    )(xp, w1p, b1p, w2p, b2p, w3p, b3s)

    return out[0, :B].reshape(B, 1)


def init_params(key, input_size, hidden_size):
    """Deterministic init mimicking nn.Linear shapes; weights stored transposed (in, out)."""
    k1, k2, k3, k4, k5, k6 = jax.random.split(key, 6)

    def lin(kw, kb, fan_in, fan_out):
        bound = 1.0 / jnp.sqrt(fan_in)
        w = jax.random.uniform(kw, (fan_in, fan_out), jnp.float32, -bound, bound)
        b = jax.random.uniform(kb, (1, fan_out), jnp.float32, -bound, bound)
        return w, b

    w1, b1 = lin(k1, k2, input_size, hidden_size)
    w2, b2 = lin(k3, k4, hidden_size, hidden_size)
    w3, b3 = lin(k5, k6, hidden_size, 1)
    return (w1, b1, w2, b2, w3, b3)


def reference_forward(x, params):
    w1, b1, w2, b2, w3, b3 = params
    h1 = jnp.maximum(x @ w1 + b1, 0.0)
    h2 = jnp.maximum(h1 @ w2 + b2, 0.0)
    return h2 @ w3 + b3


if __name__ == "__main__":
    key = jax.random.PRNGKey(0)
    k1, k2, k3, k4 = jax.random.split(key, 4)

    fwd = jax.jit(output_layer_forward)

    def check(batch, input_size, hidden_size, kx, kp):
        x = jax.random.normal(kx, (batch, input_size), jnp.float32)
        params = init_params(kp, input_size, hidden_size)
        out = jax.block_until_ready(fwd(x, params))
        ref = reference_forward(x, params)
        assert out.shape == (batch, 1)
        # bf16 matmul operands -> relaxed tolerance vs the f32 reference.
        assert jnp.allclose(out, ref, atol=3e-2, rtol=3e-2), (
            f"mismatch vs JAX reference (max abs err "
            f"{float(jnp.max(jnp.abs(out - ref))):.4e})")

    # Small config consistent with the module's toy shapes.
    check(8, 32, 32, k1, k2)
    # Larger config exercising multi-tile grid plus batch/feature padding paths.
    check(3000, 200, 96, k3, k4)

    print("KERNEL_OK")
</pallas_src>

<mosaic_0001>
module attributes {stable_mosaic.version = 11 : i64} {
  func.func @_mlp_kernel(%arg0: i32, %arg1: memref<8x128xbf16, #tpu.memory_space<vmem>>, %arg2: memref<128x128xbf16, #tpu.memory_space<vmem>>, %arg3: memref<1x128xf32, #tpu.memory_space<vmem>>, %arg4: memref<128x128xbf16, #tpu.memory_space<vmem>>, %arg5: memref<1x128xf32, #tpu.memory_space<vmem>>, %arg6: memref<1x128xf32, #tpu.memory_space<vmem>>, %arg7: memref<1xf32, #tpu.memory_space<smem>>, %arg8: memref<1x8xf32, #tpu.memory_space<vmem>>) attributes {dimension_semantics = [#tpu.dimension_semantics<parallel>], iteration_bounds = array<i64: 1>, scalar_prefetch = 0 : i64, scratch_operands = 0 : i64, tpu.core_type = #tpu.core_type<tc>, window_params = [{transform_indices = @transform_0, window_bounds = array<i64: 8, 128>}, {pipeline_mode = #tpu.pipeline_mode<synchronous>, transform_indices = @transform_1, window_bounds = array<i64: 128, 128>}, {pipeline_mode = #tpu.pipeline_mode<synchronous>, transform_indices = @transform_2, window_bounds = array<i64: 1, 128>}, {pipeline_mode = #tpu.pipeline_mode<synchronous>, transform_indices = @transform_3, window_bounds = array<i64: 128, 128>}, {pipeline_mode = #tpu.pipeline_mode<synchronous>, transform_indices = @transform_4, window_bounds = array<i64: 1, 128>}, {pipeline_mode = #tpu.pipeline_mode<synchronous>, transform_indices = @transform_5, window_bounds = array<i64: 1, 128>}, {transform_indices = @transform_6, window_bounds = array<i64: 1>}, {transform_indices = @transform_7, window_bounds = array<i64: 1, 8>}]} {
    %c0 = arith.constant 0 : index
    %c0_0 = arith.constant 0 : index
    %0 = vector.load %arg1[%c0, %c0_0] : memref<8x128xbf16, #tpu.memory_space<vmem>>, vector<8x128xbf16>
    %c0_1 = arith.constant 0 : index
    %c0_2 = arith.constant 0 : index
    %1 = vector.load %arg2[%c0_1, %c0_2] : memref<128x128xbf16, #tpu.memory_space<vmem>>, vector<128x128xbf16>
    %cst = arith.constant dense<0.000000e+00> : vector<8x128xf32>
    %2 = tpu.matmul %0, %1, %cst {dimension_numbers = #tpu.dot_dimension_numbers<[1], [0], [0], [1], [0, 0, 1, 1], [], []>} : vector<8x128xbf16>, vector<128x128xbf16>, vector<8x128xf32> -> vector<8x128xf32>
    %c0_3 = arith.constant 0 : index
    %c0_4 = arith.constant 0 : index
    %3 = vector.load %arg3[%c0_3, %c0_4] : memref<1x128xf32, #tpu.memory_space<vmem>>, vector<1x128xf32>
    %4 = vector.broadcast %3 : vector<1x128xf32> to vector<8x128xf32>
    %5 = arith.addf %2, %4 : vector<8x128xf32>
    %cst_5 = arith.constant 0.000000e+00 : f32
    %6 = vector.broadcast %cst_5 : f32 to vector<8x128xf32>
    %7 = arith.maximumf %5, %6 : vector<8x128xf32>
    %8 = arith.truncf %7 : vector<8x128xf32> to vector<8x128xbf16>
    %c0_6 = arith.constant 0 : index
    %c0_7 = arith.constant 0 : index
    %9 = vector.load %arg4[%c0_6, %c0_7] : memref<128x128xbf16, #tpu.memory_space<vmem>>, vector<128x128xbf16>
    %cst_8 = arith.constant dense<0.000000e+00> : vector<8x128xf32>
    %10 = tpu.matmul %8, %9, %cst_8 {dimension_numbers = #tpu.dot_dimension_numbers<[1], [0], [0], [1], [0, 0, 1, 1], [], []>} : vector<8x128xbf16>, vector<128x128xbf16>, vector<8x128xf32> -> vector<8x128xf32>
    %c0_9 = arith.constant 0 : index
    %c0_10 = arith.constant 0 : index
    %11 = vector.load %arg5[%c0_9, %c0_10] : memref<1x128xf32, #tpu.memory_space<vmem>>, vector<1x128xf32>
    %12 = vector.broadcast %11 : vector<1x128xf32> to vector<8x128xf32>
    %13 = arith.addf %10, %12 : vector<8x128xf32>
    %cst_11 = arith.constant 0.000000e+00 : f32
    %14 = vector.broadcast %cst_11 : f32 to vector<8x128xf32>
    %15 = arith.maximumf %13, %14 : vector<8x128xf32>
    %c0_12 = arith.constant 0 : index
    %c0_13 = arith.constant 0 : index
    %16 = vector.load %arg6[%c0_12, %c0_13] : memref<1x128xf32, #tpu.memory_space<vmem>>, vector<1x128xf32>
    %17 = vector.broadcast %16 : vector<1x128xf32> to vector<8x128xf32>
    %18 = arith.mulf %15, %17 : vector<8x128xf32>
    %cst_14 = arith.constant dense<0.000000e+00> : vector<8xf32>
    %19 = vector.multi_reduction <add>, %18, %cst_14 [1] : vector<8x128xf32> to vector<8xf32>
    %c0_15 = arith.constant 0 : index
    %20 = memref.load %arg7[%c0_15] : memref<1xf32, #tpu.memory_space<smem>>
    %21 = vector.broadcast %20 : f32 to vector<8xf32>
    %22 = arith.addf %19, %21 : vector<8xf32>
    %23 = vector.shape_cast %22 : vector<8xf32> to vector<1x8xf32>
    %c0_16 = arith.constant 0 : index
    %c0_17 = arith.constant 0 : index
    %24 = vector.load %arg8[%c0_16, %c0_17] : memref<1x8xf32, #tpu.memory_space<vmem>>, vector<1x8xf32>
    tpu.vector_store %arg8[%c0_16, %c0_17], %23 {strides = array<i32>} : memref<1x8xf32, #tpu.memory_space<vmem>>, vector<1x8xf32>,
    return
  }
  func.func @transform_0(%arg0: i32) -> (i32, i32) {
    %c0_i32 = arith.constant 0 : i32
    %c0_i32_0 = arith.constant 0 : i32
    return %arg0, %c0_i32 : i32, i32
  }
  func.func @transform_1(%arg0: i32) -> (i32, i32) {
    %c0_i32 = arith.constant 0 : i32
    %c0_i32_0 = arith.constant 0 : i32
    %c0_i32_1 = arith.constant 0 : i32
    return %c0_i32, %c0_i32_0 : i32, i32
  }
  func.func @transform_2(%arg0: i32) -> (i32, i32) {
    %c0_i32 = arith.constant 0 : i32
    %c0_i32_0 = arith.constant 0 : i32
    %c0_i32_1 = arith.constant 0 : i32
    return %c0_i32, %c0_i32_0 : i32, i32
  }
  func.func @transform_3(%arg0: i32) -> (i32, i32) {
    %c0_i32 = arith.constant 0 : i32
    %c0_i32_0 = arith.constant 0 : i32
    %c0_i32_1 = arith.constant 0 : i32
    return %c0_i32, %c0_i32_0 : i32, i32
  }
  func.func @transform_4(%arg0: i32) -> (i32, i32) {
    %c0_i32 = arith.constant 0 : i32
    %c0_i32_0 = arith.constant 0 : i32
    %c0_i32_1 = arith.constant 0 : i32
    return %c0_i32, %c0_i32_0 : i32, i32
  }
  func.func @transform_5(%arg0: i32) -> (i32, i32) {
    %c0_i32 = arith.constant 0 : i32
    %c0_i32_0 = arith.constant 0 : i32
    %c0_i32_1 = arith.constant 0 : i32
    return %c0_i32, %c0_i32_0 : i32, i32
  }
  func.func @transform_6(%arg0: i32) -> i32 {
    %c0_i32 = arith.constant 0 : i32
    %c0_i32_0 = arith.constant 0 : i32
    return %c0_i32 : i32
  }
  func.func @transform_7(%arg0: i32) -> (i32, i32) {
    %c0_i32 = arith.constant 0 : i32
    %c0_i32_0 = arith.constant 0 : i32
    return %c0_i32, %arg0 : i32, i32
  }
}

</mosaic_0001>

<bundles_post_ra>
// kernel: output_layer_forward.1
= control target key start
LH: loop header
LB: loop body
LE: loop exit
PB: predicated region body
PF: predicated region fallthrough
CT: control target
= control target key end

     0   :  { %v412_v1 = vmov 0.0   ;;  %vm413_vm0 = vmmov 0   ;;  %s530_s0 = inlined_call_operand.vmem [shape: bf16[8,128], index: 0, kind: input, shape index: {}]   ;;  %s531_s1 = inlined_call_operand.vmem [shape: bf16[128,128], index: 1, kind: input, shape index: {}]   ;;  %s532_s2 = inlined_call_operand.vmem [shape: f32[1,128], index: 2, kind: input, shape index: {}]   ;;  %s533_s3 = inlined_call_operand.vmem [shape: bf16[128,128], index: 3, kind: input, shape index: {}]   ;;  %s534_s4 = inlined_call_operand.vmem [shape: f32[1,128], index: 4, kind: input, shape index: {}]   ;;  %s535_s5 = inlined_call_operand.vmem [shape: f32[1,128], index: 5, kind: input, shape index: {}]   ;;  %s536_s6 = inlined_call_operand.<no memory space> [shape: f32[1], index: 6, kind: input, shape index: {}]   ;;  %s537_s7 = inlined_call_operand.hbm [shape: f32[1,8], index: 7, kind: output, shape index: {}]  }
   0x1   :  { %v372_v0 = vld [vmem:[%s531_s1] sm:$0xff]   ;;  %329 = vmatprep.subr.bf16.mxu0 %v412_v1  ;;  %349 = vmatprep.subr.bf16.mxu1 %v412_v1  ;;  %v373_v2 = vld [vmem:[%s531_s1 + $0x8] sm:$0xff]   ;;  %v374_v3 = vld [vmem:[%s531_s1 + $0x10] sm:$0xff]  }
   0x2   :  { %330 = vmatpush3.bf16.msra.mxu0 %v372_v0  ;;  %345 = vmatprep.mubr.msk.bf16.mxu0 %vm413_vm0, %v412_v1  ;;  %v380_v4 = vld [vmem:[%s533_s3] sm:$0xff]   ;;  %v375_v5 = vld [vmem:[%s531_s1 + $0x18] sm:$0xff]   ;;  %v381_v6 = vld [vmem:[%s533_s3 + $0x8] sm:$0xff]  }
   0x3   :  { %331 = vmatprep.subr.bf16.mxu0 %v412_v1  ;;  %365 = vmatprep.mubr.msk.bf16.mxu1 %vm413_vm0, %v412_v1  ;;  %v376_v7 = vld [vmem:[%s531_s1 + $0x20] sm:$0xff]   ;;  %v382_v8 = vld [vmem:[%s533_s3 + $0x10] sm:$0xff]  }
   0x4   :  { %350 = vmatpush3.bf16.msra.mxu1 %v380_v4 }
   0x5   :  { %351 = vmatprep.subr.bf16.mxu1 %v412_v1 }
   0x6   :  { %332 = vmatpush3.bf16.msra.mxu0 %v373_v2 }
   0x7   :  { %333 = vmatprep.subr.bf16.mxu0 %v412_v1 }
   0x8   :  { %352 = vmatpush3.bf16.msra.mxu1 %v381_v6 }
   0x9   :  { %353 = vmatprep.subr.bf16.mxu1 %v412_v1 }
   0xa   :  { %334 = vmatpush3.bf16.msra.mxu0 %v374_v3 }
   0xb   :  { %335 = vmatprep.subr.bf16.mxu0 %v412_v1 }
   0xe   :  { %336 = vmatpush3.bf16.msra.mxu0 %v375_v5 }
   0xf   :  { %337 = vmatprep.subr.bf16.mxu0 %v412_v1 }
  0x10   :  { %13 = vsyncpa [#allocation4], 0  ;;  %v377_v9 = vld [vmem:[%s531_s1 + $0x28] sm:$0xff]   ;;  %354 = vmatpush3.bf16.msra.mxu1 %v382_v8  ;;  %v383_v10 = vld [vmem:[%s533_s3 + $0x18] sm:$0xff]   ;;  %v269_v35 = vlaneseq  ;;  %v266_v38 = vstv %s536_s6  ;;  %vm276_vm1 = vcmask 57344  }
  0x11   :  { %355 = vmatprep.subr.bf16.mxu1 %v412_v1  ;;  %v378_v11 = vld [vmem:[%s531_s1 + $0x30] sm:$0xff]   ;;  %v384_v12 = vld [vmem:[%s533_s3 + $0x20] sm:$0xff]   ;;  %v379_v13 = vld [vmem:[%s531_s1 + $0x38] sm:$0xff]  }
  0x12   :  { %338 = vmatpush3.bf16.msra.mxu0 %v376_v7  ;;  %v385_v14 = vld [vmem:[%s533_s3 + $0x28] sm:$0xff]   ;;  %v29_v15 = vld [vmem:[%s530_s0] sm:$0xf]  ;;  %v386_v16 = vld [vmem:[%s533_s3 + $0x30] sm:$0xff]   ;;  %v270_v36 = vand.u32 127, %v269_v35  ;;  %v272_v37 = vshrl.u32 %v269_v35, 7 }
  0x13   :  { %339 = vmatprep.subr.bf16.mxu0 %v412_v1  ;;  %v387_v17 = vld [vmem:[%s533_s3 + $0x38] sm:$0xff]   ;;  %v292_v18 = vld [vmem:[%s532_s2] ss:$0 sm:$0xff] }
  0x14   :  { %356 = vmatpush3.bf16.msra.mxu1 %v383_v10  ;;  %v301_v26 = vld [vmem:[%s534_s4] ss:$0 sm:$0xff]  ;;  %v273_v39 = vsub.s32 %v270_v36, %v272_v37  ;;  %s414_s4 = smov [#allocation3]  }
  0x15   :  { %357 = vmatprep.subr.bf16.mxu1 %v412_v1  ;;  %v310_v31 = vld [vmem:[%s535_s5] ss:$0 sm:$0xff]  ;;  %s284_s16 = sshll.u32 %s414_s4, 4  ;;  %s285_s16 = int_to_ptr.vmem [resolvable:$true] %s284_s16 }
  0x16   :  { %340 = vmatpush3.bf16.msra.mxu0 %v377_v9  ;;  %s388_s5 = scalar_lea.vmem %s285_s16, 16  ;;  %s392_s17 = scalar_lea.vmem %s285_s16, 32 }
  0x17   :  { %341 = vmatprep.subr.bf16.mxu0 %v412_v1  ;;  %p389_p0 = scmp.ne.s32.totalorder %s285_s16, %s388_s5  ;;  %p393_p1 = scmp.lt.s32.totalorder %s285_s16, %s285_s16 }
  0x18   :  { %358 = vmatpush3.bf16.msra.mxu1 %v384_v12  ;;  %p394_p2 = scmp.lt.s32.totalorder %s392_s17, %s388_s5 }
  0x19   :  { %359 = vmatprep.subr.bf16.mxu1 %v412_v1 }
  0x1a   :  { %342 = vmatpush3.bf16.msra.mxu0 %v378_v11  ;;  %p395_p3 = por %p394_p2, %p393_p1 }
  0x1b   :  { %343 = vmatprep.subr.bf16.mxu0 %v412_v1 }
  0x1c   :  { %360 = vmatpush3.bf16.msra.mxu1 %v385_v14  ;;  %p396_p4 = pnand %p395_p3, %p389_p0 }
  0x1d   :  { %361 = vmatprep.subr.bf16.mxu1 %v412_v1 }
  0x1e   :  { %344 = vmatpush3.bf16.msra.mxu0 %v379_v13 }
  0x20   :  { %362 = vmatpush3.bf16.msra.mxu1 %v386_v16 }
  0x21   :  { %346 = vmatmul.mubr.bf16.vlgmr.msra.gmra.mrb[0].mxu0 %v29_v15  ;;  %363 = vmatprep.subr.bf16.mxu1 %v412_v1 }
  0x24   :  { %364 = vmatpush3.bf16.msra.mxu1 %v387_v17 }
  0xf4   :  { %v135_v19 = vpop.f32.mrb[0].mxu0 }
  0xf5   :  { %v136_v20 = vadd.f32 %v292_v18, %v135_v19  ;;  %v347_v21 = vpop.f32.mrb[1].mxu0 }
  0xf6   :  { %v138_v22 = vpop.f32.mrb[2].mxu0 }
  0xf7   :  { %v141_v23 = vmax.f32 %v136_v20, 0.0  ;;  %v348_v24 = vpop.f32.mrb[3].mxu0 }
  0xf9   :  { %v142_v25 = vpack.c.bf16 %v141_v23, %v141_v23 }
  0xfb   :  { %366 = vmatmul.mubr.bf16.vlgmr.msra.gmra.mrb[0].mxu1 %v142_v25 }
 0x1ce   :  { %v248_v27 = vpop.f32.mrb[0].mxu1 }
 0x1cf   :  { %v249_v28 = vadd.f32 %v301_v26, %v248_v27  ;;  %v367_v29 = vpop.f32.mrb[1].mxu1 }
 0x1d0   :  { %v251_v30 = vpop.f32.mrb[2].mxu1 }
 0x1d1   :  { %v254_v32 = vmax.f32 %v249_v28, 0.0  ;;  %v368_v33 = vpop.f32.mrb[3].mxu1 }
 0x1d3   :  { %v262_v34 = vmul.f32 %v310_v31, %v254_v32 }
 0x1d5   :  { %263 = vadd.xlane.f32.xlu0 %v262_v34 }
 0x262   :  { %v264_v40 = vpop.xlane.xlu0 %263 }
 0x263   :  { %v267_v41 = vadd.f32 %v266_v38, %v264_v40 }
 0x265   :  { %v274_v42 = vrot.slane %v267_v41, %v273_v39 }
 0x267   :  { %277 = vst.msk [vmem:[#allocation3] sm:$0x1] %vm276_vm1, %v274_v42 }
 0x268   :  { %399 = shalt.err (!%p396_p4)
}
 0x269   :  { %s400_s6 = scalar_lea.hbm %s537_s7, 16 }
 0x26a   :  { %p401_p5 = scmp.ne.s32.totalorder %s537_s7, %s400_s6  ;;  %p404_p6 = scmp.lt.u32.totalorder %s400_s6, %s537_s7 }
 0x26c   :  { %p406_p7 = pnand %p404_p6, %p401_p5 }
 0x26e   :  { %409 = shalt.err (!%p406_p7)
}
 0x26f   :  { %287 = dma.vmem_to_hbm [thread:$0]  %s285_s16, 16, %s537_s7, [#allocation4]  }
 0x270   :  { %410 = dma.done.wait [#allocation4], 16  }
 0x271   :  { %411 = vsyncadd [#allocation4], 4294967280 }
 0x272   :  { %291 = vsyncpa [#allocation4], 1 }

</bundles_post_ra>
